<compile_context>
chip_gen: v6e
topology: v6e:2x2x1
jax: 0.10.0
libtpu: 0.0.40
codegen_flags: <defaults>
</compile_context>

<pallas_src>
import functools

import jax
import jax.numpy as jnp
from jax.experimental import pallas as pl
from jax.experimental.pallas import tpu as pltpu


def _autoencoder_kernel(num_linear, *refs):
    """refs = (x_ref, w0, b0, w1, b1, ..., w_{n-1}, b_{n-1}, out_ref).

    Weights are pre-transposed to (in_features, out_features) and may be bf16;
    every matmul accumulates in f32 on the MXU. Bias add and activations run in
    f32 on the VPU/EUP. The whole layer chain is fused; intermediates never leave
    VMEM/vregs.
    """
    x_ref = refs[0]
    out_ref = refs[-1]
    param_refs = refs[1:-1]
    assert len(param_refs) == 2 * num_linear

    h = x_ref[...].astype(jnp.float32)
    for i in range(num_linear):
        w = param_refs[2 * i][...]          # (in_f, out_f), bf16 (or f32)
        b = param_refs[2 * i + 1][...]      # (1, out_f), f32
        # y = h @ W + b  — MXU matmul (bf16 inputs, f32 accumulate), f32 bias add.
        y = jnp.dot(h.astype(w.dtype), w, preferred_element_type=jnp.float32) + b
        if i < num_linear - 1:
            h = jnp.maximum(y, 0.0)         # ReLU (VPU, f32)
        else:
            h = jax.nn.sigmoid(y)           # final Sigmoid (EUP + VPU, f32)
    out_ref[...] = h.astype(out_ref.dtype)


def autoencoder_forward(x, weights, biases, *, block_batch=None,
                        param_dtype=jnp.bfloat16):
    """x: (B, in_size); weights[i]: (out_i, in_i) PyTorch layout; biases[i]: (out_i,)."""
    num_linear = len(weights)
    batch, in_size = x.shape
    out_features = weights[-1].shape[0]

    # ---- batch tile: multiple of 8 sublanes, capped so tiles stay small in VMEM ----
    if block_batch is None:
        block_batch = min(512, max(batch, 8))
    block_batch = max(8, (block_batch // 8) * 8)
    block_batch = min(block_batch, 512)

    padded_batch = pl.cdiv(batch, block_batch) * block_batch
    if padded_batch != batch:
        x = jnp.pad(x, ((0, padded_batch - batch), (0, 0)))
    grid = (padded_batch // block_batch,)

    # ---- pack params: pre-transposed bf16 weights (in, out); f32 (1, out) biases ----
    flat_params = []
    param_specs = []
    for w, b in zip(weights, biases):
        wt = jnp.asarray(w).T.astype(param_dtype)            # (in_f, out_f)
        bb = jnp.asarray(b).reshape(1, -1).astype(jnp.float32)
        flat_params.append(wt)
        flat_params.append(bb)
        # Constant block index across the grid -> params stay VMEM-resident.
        param_specs.append(pl.BlockSpec(wt.shape, lambda i: (0, 0)))
        param_specs.append(pl.BlockSpec(bb.shape, lambda i: (0, 0)))

    in_specs = [pl.BlockSpec((block_batch, in_size), lambda i: (i, 0))] + param_specs
    out_spec = pl.BlockSpec((block_batch, out_features), lambda i: (i, 0))

    # ---- explicit VMEM budget: double-buffered x/out tiles + resident params ----
    tile_bytes = block_batch * (in_size + out_features) * 4 * 2   # 2 buffers each
    param_bytes = sum(int(p.size) * jnp.dtype(p.dtype).itemsize for p in flat_params)
    vmem_limit = int(min(48 << 20, max(32 << 20, 2 * (tile_bytes + param_bytes))))

    kernel = functools.partial(_autoencoder_kernel, num_linear)
    out = pl.pallas_call(
        kernel,
        out_shape=jax.ShapeDtypeStruct((padded_batch, out_features), jnp.float32),
        grid_spec=pltpu.PrefetchScalarGridSpec(
            num_scalar_prefetch=0,
            grid=grid,
            in_specs=in_specs,
            out_specs=out_spec,
        ),
        compiler_params=pltpu.CompilerParams(
            dimension_semantics=("parallel",),   # v7x: batch tiles split across 2 TCs
            vmem_limit_bytes=vmem_limit,
        ),
    )(x, *flat_params)
    return out[:batch]


def build_autoencoder_params(key, in_size, latent_size, num_layers):
    """Replicates the layer-size schedule of the PyTorch AutoEncoder.__init__."""
    num_neurons = []
    cur = in_size
    for _ in range(num_layers):
        num_neurons.append(cur)
        cur = int(cur / 2)
    num_neurons.append(latent_size)

    # Encoder: num_neurons[l] -> num_neurons[l+1], ReLU after each.
    # Decoder: num_neurons[l] -> num_neurons[l-1] for l = num_layers..1,
    #          ReLU after each except the last, which gets Sigmoid.
    layer_dims = []
    for l in range(num_layers):
        layer_dims.append((num_neurons[l], num_neurons[l + 1]))
    for l in range(num_layers, 0, -1):
        layer_dims.append((num_neurons[l], num_neurons[l - 1]))

    weights, biases = [], []
    for (fan_in, fan_out) in layer_dims:
        key, wk, bk = jax.random.split(key, 3)
        bound = 1.0 / jnp.sqrt(jnp.float32(fan_in))  # PyTorch Linear default init
        w = jax.random.uniform(wk, (fan_out, fan_in), jnp.float32, -bound, bound)
        b = jax.random.uniform(bk, (fan_out,), jnp.float32, -bound, bound)
        weights.append(w)
        biases.append(b)
    return weights, biases


def reference_forward_f32(x, weights, biases):
    """Pure-f32 JAX reference of the PyTorch forward."""
    h = x
    n = len(weights)
    for i, (w, b) in enumerate(zip(weights, biases)):
        h = h @ w.T + b
        h = jnp.maximum(h, 0.0) if i < n - 1 else jax.nn.sigmoid(h)
    return h


def reference_forward_matched(x, weights, biases, param_dtype=jnp.bfloat16):
    """Same precision recipe as the kernel (bf16 matmul inputs, f32 accumulate)."""
    h = x.astype(jnp.float32)
    n = len(weights)
    for i, (w, b) in enumerate(zip(weights, biases)):
        wt = w.T.astype(param_dtype)
        y = jnp.dot(h.astype(param_dtype), wt,
                    preferred_element_type=jnp.float32) + b.astype(jnp.float32)
        h = jnp.maximum(y, 0.0) if i < n - 1 else jax.nn.sigmoid(y)
    return h


if __name__ == "__main__":
    key = jax.random.PRNGKey(0)

    # in_size=128, latent=32, num_layers=2:
    #   encoder: 128 -> 64 (ReLU) -> 32 (ReLU)
    #   decoder: 32 -> 64 (ReLU) -> 128 (Sigmoid)
    # batch=256 with 128-row tiles -> 2 grid steps, MXU M-dim well fed.
    in_size, latent_size, num_layers = 128, 32, 2
    batch = 256

    key, pkey, xkey = jax.random.split(key, 3)
    weights, biases = build_autoencoder_params(pkey, in_size, latent_size, num_layers)
    x = jax.random.normal(xkey, (batch, in_size), jnp.float32)

    out = autoencoder_forward(x, weights, biases, block_batch=128)
    out = jax.block_until_ready(out)
    assert out.shape == (batch, in_size)

    # Precision-matched reference (bf16 matmul inputs, f32 accumulate): tight check.
    ref_matched = reference_forward_matched(x, weights, biases)
    assert jnp.max(jnp.abs(out - ref_matched)) < 2e-4

    # Full-f32 reference: loose check covering bf16 weight/activation rounding.
    ref_f32 = reference_forward_f32(x, weights, biases)
    assert jnp.max(jnp.abs(out - ref_f32)) < 1e-1

    print("KERNEL_OK")
</pallas_src>

<mosaic_0001>
module attributes {stable_mosaic.version = 11 : i64} {
  func.func @_autoencoder_kernel(%arg0: i32, %arg1: memref<128x128xf32, #tpu.memory_space<vmem>>, %arg2: memref<128x64xbf16, #tpu.memory_space<vmem>>, %arg3: memref<1x64xf32, #tpu.memory_space<vmem>>, %arg4: memref<64x32xbf16, #tpu.memory_space<vmem>>, %arg5: memref<1x32xf32, #tpu.memory_space<vmem>>, %arg6: memref<32x64xbf16, #tpu.memory_space<vmem>>, %arg7: memref<1x64xf32, #tpu.memory_space<vmem>>, %arg8: memref<64x128xbf16, #tpu.memory_space<vmem>>, %arg9: memref<1x128xf32, #tpu.memory_space<vmem>>, %arg10: memref<128x128xf32, #tpu.memory_space<vmem>>) attributes {dimension_semantics = [#tpu.dimension_semantics<parallel>], iteration_bounds = array<i64: 2>, scalar_prefetch = 0 : i64, scratch_operands = 0 : i64, tpu.core_type = #tpu.core_type<tc>, window_params = [{transform_indices = @transform_0, window_bounds = array<i64: 128, 128>}, {pipeline_mode = #tpu.pipeline_mode<synchronous>, transform_indices = @transform_1, window_bounds = array<i64: 128, 64>}, {pipeline_mode = #tpu.pipeline_mode<synchronous>, transform_indices = @transform_2, window_bounds = array<i64: 1, 64>}, {pipeline_mode = #tpu.pipeline_mode<synchronous>, transform_indices = @transform_3, window_bounds = array<i64: 64, 32>}, {pipeline_mode = #tpu.pipeline_mode<synchronous>, transform_indices = @transform_4, window_bounds = array<i64: 1, 32>}, {pipeline_mode = #tpu.pipeline_mode<synchronous>, transform_indices = @transform_5, window_bounds = array<i64: 32, 64>}, {pipeline_mode = #tpu.pipeline_mode<synchronous>, transform_indices = @transform_6, window_bounds = array<i64: 1, 64>}, {pipeline_mode = #tpu.pipeline_mode<synchronous>, transform_indices = @transform_7, window_bounds = array<i64: 64, 128>}, {pipeline_mode = #tpu.pipeline_mode<synchronous>, transform_indices = @transform_8, window_bounds = array<i64: 1, 128>}, {transform_indices = @transform_9, window_bounds = array<i64: 128, 128>}]} {
    %c0 = arith.constant 0 : index
    %c0_0 = arith.constant 0 : index
    %0 = vector.load %arg1[%c0, %c0_0] : memref<128x128xf32, #tpu.memory_space<vmem>>, vector<128x128xf32>
    %c0_1 = arith.constant 0 : index
    %c0_2 = arith.constant 0 : index
    %1 = vector.load %arg2[%c0_1, %c0_2] : memref<128x64xbf16, #tpu.memory_space<vmem>>, vector<128x64xbf16>
    %c0_3 = arith.constant 0 : index
    %c0_4 = arith.constant 0 : index
    %2 = vector.load %arg3[%c0_3, %c0_4] : memref<1x64xf32, #tpu.memory_space<vmem>>, vector<1x64xf32>
    %3 = arith.truncf %0 : vector<128x128xf32> to vector<128x128xbf16>
    %cst = arith.constant dense<0.000000e+00> : vector<128x64xf32>
    %4 = tpu.matmul %3, %1, %cst {dimension_numbers = #tpu.dot_dimension_numbers<[1], [0], [0], [1], [0, 0, 1, 1], [], []>} : vector<128x128xbf16>, vector<128x64xbf16>, vector<128x64xf32> -> vector<128x64xf32>
    %5 = vector.broadcast %2 : vector<1x64xf32> to vector<128x64xf32>
    %6 = arith.addf %4, %5 : vector<128x64xf32>
    %cst_5 = arith.constant 0.000000e+00 : f32
    %7 = vector.broadcast %cst_5 : f32 to vector<128x64xf32>
    %8 = arith.maximumf %6, %7 : vector<128x64xf32>
    %c0_6 = arith.constant 0 : index
    %c0_7 = arith.constant 0 : index
    %9 = vector.load %arg4[%c0_6, %c0_7] : memref<64x32xbf16, #tpu.memory_space<vmem>>, vector<64x32xbf16>
    %c0_8 = arith.constant 0 : index
    %c0_9 = arith.constant 0 : index
    %10 = vector.load %arg5[%c0_8, %c0_9] : memref<1x32xf32, #tpu.memory_space<vmem>>, vector<1x32xf32>
    %11 = arith.truncf %8 : vector<128x64xf32> to vector<128x64xbf16>
    %cst_10 = arith.constant dense<0.000000e+00> : vector<128x32xf32>
    %12 = tpu.matmul %11, %9, %cst_10 {dimension_numbers = #tpu.dot_dimension_numbers<[1], [0], [0], [1], [0, 0, 1, 1], [], []>} : vector<128x64xbf16>, vector<64x32xbf16>, vector<128x32xf32> -> vector<128x32xf32>
    %13 = vector.broadcast %10 : vector<1x32xf32> to vector<128x32xf32>
    %14 = arith.addf %12, %13 : vector<128x32xf32>
    %cst_11 = arith.constant 0.000000e+00 : f32
    %15 = vector.broadcast %cst_11 : f32 to vector<128x32xf32>
    %16 = arith.maximumf %14, %15 : vector<128x32xf32>
    %c0_12 = arith.constant 0 : index
    %c0_13 = arith.constant 0 : index
    %17 = vector.load %arg6[%c0_12, %c0_13] : memref<32x64xbf16, #tpu.memory_space<vmem>>, vector<32x64xbf16>
    %c0_14 = arith.constant 0 : index
    %c0_15 = arith.constant 0 : index
    %18 = vector.load %arg7[%c0_14, %c0_15] : memref<1x64xf32, #tpu.memory_space<vmem>>, vector<1x64xf32>
    %19 = arith.truncf %16 : vector<128x32xf32> to vector<128x32xbf16>
    %cst_16 = arith.constant dense<0.000000e+00> : vector<128x64xf32>
    %20 = tpu.matmul %19, %17, %cst_16 {dimension_numbers = #tpu.dot_dimension_numbers<[1], [0], [0], [1], [0, 0, 1, 1], [], []>} : vector<128x32xbf16>, vector<32x64xbf16>, vector<128x64xf32> -> vector<128x64xf32>
    %21 = vector.broadcast %18 : vector<1x64xf32> to vector<128x64xf32>
    %22 = arith.addf %20, %21 : vector<128x64xf32>
    %cst_17 = arith.constant 0.000000e+00 : f32
    %23 = vector.broadcast %cst_17 : f32 to vector<128x64xf32>
    %24 = arith.maximumf %22, %23 : vector<128x64xf32>
    %c0_18 = arith.constant 0 : index
    %c0_19 = arith.constant 0 : index
    %25 = vector.load %arg8[%c0_18, %c0_19] : memref<64x128xbf16, #tpu.memory_space<vmem>>, vector<64x128xbf16>
    %c0_20 = arith.constant 0 : index
    %c0_21 = arith.constant 0 : index
    %26 = vector.load %arg9[%c0_20, %c0_21] : memref<1x128xf32, #tpu.memory_space<vmem>>, vector<1x128xf32>
    %27 = arith.truncf %24 : vector<128x64xf32> to vector<128x64xbf16>
    %cst_22 = arith.constant dense<0.000000e+00> : vector<128x128xf32>
    %28 = tpu.matmul %27, %25, %cst_22 {dimension_numbers = #tpu.dot_dimension_numbers<[1], [0], [0], [1], [0, 0, 1, 1], [], []>} : vector<128x64xbf16>, vector<64x128xbf16>, vector<128x128xf32> -> vector<128x128xf32>
    %29 = vector.broadcast %26 : vector<1x128xf32> to vector<128x128xf32>
    %30 = arith.addf %28, %29 : vector<128x128xf32>
    %31 = arith.negf %30 : vector<128x128xf32>
    %32 = math.exp %31 : vector<128x128xf32>
    %cst_23 = arith.constant 1.000000e+00 : f32
    %33 = vector.broadcast %cst_23 : f32 to vector<128x128xf32>
    %34 = arith.addf %33, %32 : vector<128x128xf32>
    %35 = arith.divf %33, %34 : vector<128x128xf32>
    %c0_24 = arith.constant 0 : index
    %c0_25 = arith.constant 0 : index
    %36 = vector.load %arg10[%c0_24, %c0_25] : memref<128x128xf32, #tpu.memory_space<vmem>>, vector<128x128xf32>
    tpu.vector_store %arg10[%c0_24, %c0_25], %35 {strides = array<i32>} : memref<128x128xf32, #tpu.memory_space<vmem>>, vector<128x128xf32>,
    return
  }
  func.func @transform_0(%arg0: i32) -> (i32, i32) {
    %c0_i32 = arith.constant 0 : i32
    %c0_i32_0 = arith.constant 0 : i32
    return %arg0, %c0_i32 : i32, i32
  }
  func.func @transform_1(%arg0: i32) -> (i32, i32) {
    %c0_i32 = arith.constant 0 : i32
    %c0_i32_0 = arith.constant 0 : i32
    %c0_i32_1 = arith.constant 0 : i32
    return %c0_i32, %c0_i32_0 : i32, i32
  }
  func.func @transform_2(%arg0: i32) -> (i32, i32) {
    %c0_i32 = arith.constant 0 : i32
    %c0_i32_0 = arith.constant 0 : i32
    %c0_i32_1 = arith.constant 0 : i32
    return %c0_i32, %c0_i32_0 : i32, i32
  }
  func.func @transform_3(%arg0: i32) -> (i32, i32) {
    %c0_i32 = arith.constant 0 : i32
    %c0_i32_0 = arith.constant 0 : i32
    %c0_i32_1 = arith.constant 0 : i32
    return %c0_i32, %c0_i32_0 : i32, i32
  }
  func.func @transform_4(%arg0: i32) -> (i32, i32) {
    %c0_i32 = arith.constant 0 : i32
    %c0_i32_0 = arith.constant 0 : i32
    %c0_i32_1 = arith.constant 0 : i32
    return %c0_i32, %c0_i32_0 : i32, i32
  }
  func.func @transform_5(%arg0: i32) -> (i32, i32) {
    %c0_i32 = arith.constant 0 : i32
    %c0_i32_0 = arith.constant 0 : i32
    %c0_i32_1 = arith.constant 0 : i32
    return %c0_i32, %c0_i32_0 : i32, i32
  }
  func.func @transform_6(%arg0: i32) -> (i32, i32) {
    %c0_i32 = arith.constant 0 : i32
    %c0_i32_0 = arith.constant 0 : i32
    %c0_i32_1 = arith.constant 0 : i32
    return %c0_i32, %c0_i32_0 : i32, i32
  }
  func.func @transform_7(%arg0: i32) -> (i32, i32) {
    %c0_i32 = arith.constant 0 : i32
    %c0_i32_0 = arith.constant 0 : i32
    %c0_i32_1 = arith.constant 0 : i32
    return %c0_i32, %c0_i32_0 : i32, i32
  }
  func.func @transform_8(%arg0: i32) -> (i32, i32) {
    %c0_i32 = arith.constant 0 : i32
    %c0_i32_0 = arith.constant 0 : i32
    %c0_i32_1 = arith.constant 0 : i32
    return %c0_i32, %c0_i32_0 : i32, i32
  }
  func.func @transform_9(%arg0: i32) -> (i32, i32) {
    %c0_i32 = arith.constant 0 : i32
    %c0_i32_0 = arith.constant 0 : i32
    return %arg0, %c0_i32 : i32, i32
  }
}

</mosaic_0001>

<bundles_post_ra>
// kernel: tpu_custom_call.1
= control target key start
LH: loop header
LB: loop body
LE: loop exit
PB: predicated region body
PF: predicated region fallthrough
CT: control target
= control target key end

     0   :  { %14 = vsyncpa [#allocation3], 0  ;;  %s2104_s0 = inlined_call_operand.hbm [shape: f32[256,128], index: 0, kind: input, shape index: {}]   ;;  %s2105_s1 = inlined_call_operand.vmem [shape: bf16[128,64], index: 1, kind: input, shape index: {}]   ;;  %s2106_s2 = inlined_call_operand.vmem [shape: f32[1,64], index: 2, kind: input, shape index: {}]   ;;  %s2107_s3 = inlined_call_operand.vmem [shape: bf16[64,32], index: 3, kind: input, shape index: {}]   ;;  %s2108_s4 = inlined_call_operand.vmem [shape: f32[1,32], index: 4, kind: input, shape index: {}]   ;;  %s2109_s5 = inlined_call_operand.vmem [shape: bf16[32,64], index: 5, kind: input, shape index: {}]   ;;  %s2110_s6 = inlined_call_operand.vmem [shape: f32[1,64], index: 6, kind: input, shape index: {}]   ;;  %s2111_s7 = inlined_call_operand.vmem [shape: bf16[64,128], index: 7, kind: input, shape index: {}]   ;;  %s2112_s8 = inlined_call_operand.vmem [shape: f32[1,128], index: 8, kind: input, shape index: {}]   ;;  %s2113_s9 = inlined_call_operand.hbm [shape: f32[256,128], index: 9, kind: output, shape index: {}]  }
   0x1   :  { %16 = vsyncpa [#allocation3 + $0x1], 0 }
   0x2   :  { %17 = vsyncpa [#allocation4], 0 }
   0x3   :  { %19 = vsyncpa [#allocation4 + $0x1], 0  ;;  %s1801_s30 = smov 0   ;;  %s1803_s10 = smov 0  }
   0x4   :  { %s1805_s11 = smov 0   ;;  %s1807_s12 = smov 0  }
   0x5 LB: > { %2117 = sst [smem:[#allocation8_spill]] %s1739_s11  ;;  %s1822_s13 = sadd.s32 4294967295, %s1743_s12   ;;  %s1743_s12 = sphi %s1807_s12, %s2132_s12   ;;  %s1739_s11 = sphi %s1805_s11, %s2129_s11   ;;  %s1735_s10 = sphi %s1803_s10, %s2131_s10   ;;  %s1731_s30 = sphi %s1801_s30, %s2130_s30  }
   0x6   : > { %s1283_s14 = sadd.s32 4294967294, %s1743_s12   ;;  %s1826_s15 = sadd.s32 1, %s1743_s12  }
   0x7   : > { %s32_s16 = sadd.s32 1, %s1739_s11  ;;  %s29_s17 = ssub.s32 %s1743_s12, %s1826_s15 }
   0x8   : > { %p39_p0 = scmp.ne.s32.totalorder %s1739_s11, %s1735_s10  ;;  %p30_p1 = scmp.eq.s32.totalorder %s29_s17, 0 }
   0x9   : > { %p40_p2 = scmp.eq.s32.totalorder %s1743_s12, 0  ;;  %p45_p3 = scmp.ne.s32.totalorder %s1735_s10, %s1731_s30 }
   0xa   : > { %p46_p4 = scmp.eq.s32.totalorder %s1822_s13, 0  ;;  %p237_p7 = scmp.eq.s32.totalorder %s1822_s13, 1 }
   0xb   : > { %s1838_s18 = scalar_select %p30_p1, %s1739_s11, %s32_s16  }
   0xc   : > { %p1840_p5 = por %p40_p2, %p39_p0  ;;  %p1844_p6 = por %p46_p4, %p45_p3 }
   0xd   : > { %2118 = sst [smem:[#allocation9_spill]] %s1838_s18  ;;  %p243_p8 = scmp.eq.s32.totalorder %s1283_s14, 1 }
   0xe   : > { %s2120_s20 = scalar_select %p1844_p6, 1, 0 }
   0xf   : > { %p1531_p10 = scmp.lt.s32.totalorder %s1743_s12, 2  ;;  %p1851_p11 = por %p237_p7, %p39_p0 }
  0x10   : > { %p1855_p12 = por %p243_p8, %p45_p3  ;;  %s287_s23 = sand.u32 1, %s1739_s11  }
  0x11   : > { %s2121_s21 = scalar_select %p1851_p11, 1, 0 }
  0x12   : > { %s2122_s22 = scalar_select %p1855_p12, 1, 0 }
  0x13   : > { %s1359_s24 = sshll.u32 %s1743_s12, 11  ;;  %s1286_s25 = sshll.u32 %s287_s23, 7 }
  0x14   : > { %s1864_s28 = scalar_lea.hbm %s2104_s0, %s1359_s24  ;;  %s291_s29 = scalar_lea.vmem [#allocation2], %s1286_s25 }
  0x15   : > { %s298_s14 = sshll.u32 %s291_s29, 4  ;;  %p1868_p13 = pnand %p1531_p10, %p1840_p5  ;;  %s1872_s14 = int_to_ptr.vmem [resolvable:$true] %s298_s14 }
  0x16   : > { %s1874_s17 = scalar_lea.sflag [#allocation3], %s287_s23  ;;  %s1651_s18 = scalar_lea.hbm %s1864_s28, 2048 }
  0x17   : > { %p1652_p0 = scmp.ne.s32.totalorder %s1864_s28, %s1651_s18  ;;  %p1653_p1 = pneg %p1868_p13 }
  0x18   : > { %s1656_s25 = scalar_lea.hbm %s2104_s0, 4096  ;;  %p1657_p4 = scmp.lt.s32.totalorder %s1864_s28, %s2104_s0 }
  0x19   : > { %p1654_p2 = pnand %p1653_p1, %p1652_p0  ;;  %p1658_p5 = scmp.lt.s32.totalorder %s1656_s25, %s1651_s18 }
  0x1b   : > { %p1655_p3 = pneg %p1654_p2  ;;  %p1659_p7 = por %p1658_p5, %p1657_p4 }
  0x1d   : > { %p1660_p8 = pnand %p1659_p7, %p1655_p3 }
  0x1f   : > { %1663 = shalt.err (!%p1660_p8)
}
  0x20   : > { %s1664_s23 = scalar_lea.vmem %s1872_s14, 2048  ;;  %s1745_s29 = smov [#allocation2]  }
  0x21   : > { %p1665_p10 = scmp.ne.s32.totalorder %s1872_s14, %s1664_s23  ;;  %s1669_s11 = sshll.u32 %s1745_s29, 4  ;;  %s1670_s11 = int_to_ptr.vmem [resolvable:$false] %s1669_s11 }
  0x22   : > { %s1671_s24 = scalar_lea.vmem %s1670_s11, 4096  ;;  %p1672_p2 = scmp.lt.s32.totalorder %s1872_s14, %s1670_s11 }
  0x23   : > { %p1667_p9 = pnand %p1665_p10, %p1653_p1  ;;  %p1673_p12 = scmp.lt.s32.totalorder %s1671_s24, %s1664_s23 }
  0x25   : > { %p1668_p0 = pneg %p1667_p9  ;;  %p1674_p11 = por %p1673_p12, %p1672_p2 }
  0x27   : > { %p1675_p6 = pnand %p1674_p11, %p1668_p0 }
  0x29   : > { %1678 = shalt.err (!%p1675_p6)
}
  0x2a   : > { %s1746_s18 = smov 128   ;;  %s1747_s26 = smov 8  }
  0x2b   : > { %1526 = dma.hbm_to_vmem [thread:$0]  (!%p1868_p13), %s1864_s28, 2048, %s1872_s14, %s1874_s17, %s1746_s18, %s1746_s18, %s1747_s26  }
  0x2c   : > { %p1289_p9 = scmp.ge.s32.totalorder %s1743_s12, 1  ;;  %p306_p1 = scmp.lt.s32.totalorder %s1743_s12, 3 }
  0x2e   : > { %p307_p3 = pnand %p1289_p9, %p306_p1 }
  0x2f   : > { %s1898_s11 = sand.u32 (!%p307_p3), 1, %s1735_s10   ;;  %p2124_p6 = scmp.ne.s32.totalorder (!%p307_p3), %s2120_s20, 0 }
  0x30   : > { %310 = sbr.rel (%p307_p3) target bundleno = 977 (0x3d1), region = 56  ;;  %s1290_s25 = sshll.u32 (!%p307_p3), %s1898_s11, 7 }
  0x31   : > { %s313_s19 = scalar_lea.sflag (!%p307_p3), [#allocation3], %s1898_s11  ;;  %s1904_s27 = scalar_lea.vmem (!%p307_p3), [#allocation2], %s1290_s25 }
  0x35   : > { %1722 = dma.done.wait (%p2124_p6), %s313_s19, 2048  }
  0x36   : > { %1724 = vsyncadd (%p2124_p6), %s313_s19, 4294965248  ;;  %v1569_v0 = vld [vmem:[%s2105_s1 + $0x38] sm:$0xff]   ;;  %v1570_v1 = vld [vmem:[%s2105_s1 + $0x30] sm:$0xff]   ;;  %vm609_vm0 = vcmask 523264   ;;  %vm778_vm1 = vcmask 261120   ;;  %s2036_s26 = scalar_lea.vmem [#allocation5], %s1290_s25 }
  0x37   : > { %1411 = vmatprep.subr.bf16.mxu0 %v1569_v0  ;;  %v1571_v2 = vld [vmem:[%s2105_s1 + $0x28] sm:$0xff]   ;;  %v1572_v3 = vld [vmem:[%s2105_s1 + $0x20] sm:$0xff]   ;;  %v1573_v7 = vld [vmem:[%s2105_s1 + $0x18] sm:$0xff]   ;;  %s1360_s25 = sshll.u32 %s1822_s13, 11  ;;  %s1210_s19 = sshll.u32 %s2036_s26, 4  ;;  %s2059_s19 = int_to_ptr.vmem [resolvable:$true] %s1210_s19 }
  0x38   : > { %1412 = vmatpush3.bf16.msra.mxu0 %v1569_v0  ;;  %v354_v4 = vld [vmem:[%s1904_s27] sm:$0xff]  ;;  %v355_v5 = vld [vmem:[%s1904_s27 + $0x8] sm:$0xff]  ;;  %v1574_v8 = vld [vmem:[%s2105_s1 + $0x10] sm:$0xff]   ;;  %s1197_s16 = scalar_lea.sflag [#allocation4], %s1898_s11  ;;  %s1679_s17 = scalar_lea.vmem %s2059_s19, 2048 }
  0x39   : > { %1413 = vmatprep.subr.bf16.mxu0 %v1570_v1  ;;  %v387_v6 = vpack.c.bf16 %v355_v5, %v354_v4  ;;  %v1577_v9 = vld [vmem:[%s2107_s3 + $0x18] sm:$0xff]   ;;  %v1575_v10 = vld [vmem:[%s2105_s1 + $0x8] sm:$0xff]   ;;  %v1576_v11 = vld [vmem:[%s2105_s1] sm:$0xff]   ;;  %p1680_p11 = scmp.ne.s32.totalorder %s2059_s19, %s1679_s17  ;;  %p2125_p12 = scmp.ne.s32.totalorder %s2121_s21, 0 }
  0x3a   : > { %1443 = vmatprep.subr.bf16.mxu1 %v1577_v9  ;;  %v356_v12 = vld [vmem:[%s1904_s27 + $0x10] sm:$0xff]  ;;  %v357_v13 = vld [vmem:[%s1904_s27 + $0x18] sm:$0xff]  ;;  %v358_v14 = vld [vmem:[%s1904_s27 + $0x20] sm:$0xff]  ;;  %s1748_s13 = smov [#allocation5]  }
  0x3b   : > { %1427 = vmatprep.mubr.bf16.mxu0 %v387_v6  ;;  %1444 = vmatpush3.bf16.msra.mxu1 %v1577_v9  ;;  %v359_v15 = vld [vmem:[%s1904_s27 + $0x28] sm:$0xff]  ;;  %v388_v16 = vpack.c.bf16 %v357_v13, %v356_v12  ;;  %v360_v18 = vld [vmem:[%s1904_s27 + $0x30] sm:$0xff]  ;;  %v361_v19 = vld [vmem:[%s1904_s27 + $0x38] sm:$0xff]  ;;  %p1681_p13 = pnand %p1680_p11, %p2125_p12  ;;  %s1683_s23 = sshll.u32 %s1748_s13, 4  ;;  %s1684_s23 = int_to_ptr.vmem [resolvable:$false] %s1683_s23 }
  0x3c   : > { %1414 = vmatpush3.bf16.msra.mxu0 %v1570_v1  ;;  %v389_v17 = vpack.c.bf16 %v359_v15, %v358_v14  ;;  %v362_v20 = vld [vmem:[%s1904_s27 + $0x40] sm:$0xff]  ;;  %v363_v21 = vld [vmem:[%s1904_s27 + $0x48] sm:$0xff]  ;;  %v390_v22 = vpack.c.bf16 %v361_v19, %v360_v18  ;;  %v364_v24 = vld [vmem:[%s1904_s27 + $0x50] sm:$0xff]  ;;  %s1685_s29 = scalar_lea.vmem %s1684_s23, 4096  ;;  %p1686_p5 = scmp.lt.s32.totalorder %s2059_s19, %s1684_s23 }
  0x3d   : > { %1415 = vmatprep.subr.bf16.mxu0 %v1571_v2  ;;  %v391_v23 = vpack.c.bf16 %v363_v21, %v362_v20  ;;  %v365_v25 = vld [vmem:[%s1904_s27 + $0x58] sm:$0xff]  ;;  %v366_v26 = vld [vmem:[%s1904_s27 + $0x60] sm:$0xff]  ;;  %v367_v27 = vld [vmem:[%s1904_s27 + $0x68] sm:$0xff]  ;;  %p1682_p4 = pneg %p1681_p13  ;;  %p1687_p7 = scmp.lt.s32.totalorder %s1685_s29, %s1679_s17 }
  0x3e   : > { %v392_v28 = vpack.c.bf16 %v365_v25, %v364_v24  ;;  %v393_v29 = vpack.c.bf16 %v367_v27, %v366_v26  ;;  %v368_v30 = vld [vmem:[%s1904_s27 + $0x70] sm:$0xff]  ;;  %v369_v31 = vld [vmem:[%s1904_s27 + $0x78] sm:$0xff]  ;;  %v1579_v34 = vld [vmem:[%s2107_s3 + $0x8] sm:$0xff]   ;;  %s2057_s27 = scalar_lea.hbm %s2113_s9, %s1360_s25 }
  0x3f   : > { %v394_v32 = vpack.c.bf16 %v369_v31, %v368_v30  ;;  %v1578_v33 = vld [vmem:[%s2107_s3 + $0x10] sm:$0xff]   ;;  %v1580_v35 = vld [vmem:[%s2107_s3] sm:$0xff]   ;;  %v1581_v36 = vld [vmem:[%s2109_s5 + $0x8] sm:$0xff]   ;;  %p1688_p8 = por %p1687_p7, %p1686_p5 }
  0x40   : > { %1416 = vmatpush3.bf16.msra.mxu0 %v1571_v2  ;;  %1445 = vmatprep.subr.bf16.mxu1 %v1578_v33  ;;  %v1292_v39 = vld [vmem:[%s2106_s2] ss:$0 sm:$0xff]  ;;  %v1583_v31 = vld [vmem:[%s2111_s7 + $0x18] sm:$0xff]  }
  0x41   : > { %1417 = vmatprep.subr.bf16.mxu0 %v1572_v3  ;;  %1446 = vmatpush3.bf16.msra.mxu1 %v1578_v33  ;;  %v1582_v55 = vld [vmem:[%s2109_s5] sm:$0xff]   ;;  %p1689_p10 = pnand %p1688_p8, %p1682_p4 }
  0x42   : > { %1447 = vmatprep.subr.bf16.mxu1 %v1579_v34 }
  0x44   : > { %1418 = vmatpush3.bf16.msra.mxu0 %v1572_v3 }
  0x45   : > { %1419 = vmatprep.subr.bf16.mxu0 %v1573_v7  ;;  %1448 = vmatpush3.bf16.msra.mxu1 %v1579_v34 }
  0x46   : > { %1449 = vmatprep.subr.bf16.mxu1 %v1580_v35 }
  0x48   : > { %1420 = vmatpush3.bf16.msra.mxu0 %v1573_v7 }
  0x49   : > { %1421 = vmatprep.subr.bf16.mxu0 %v1574_v8  ;;  %1450 = vmatpush3.bf16.msra.mxu1 %v1580_v35  ;;  %v1301_v35 = vld [vmem:[%s2108_s4] ss:$0 sm:$0xff] }
  0x4a   : > { %1467 = vmatprep.subr.bf16.mxu1 %v1581_v36 }
  0x4c   : > { %1422 = vmatpush3.bf16.msra.mxu0 %v1574_v8 }
  0x4d   : > { %1423 = vmatprep.subr.bf16.mxu0 %v1575_v10 }
  0x50   : > { %1424 = vmatpush3.bf16.msra.mxu0 %v1575_v10 }
  0x51   : > { %1425 = vmatprep.subr.bf16.mxu0 %v1576_v11 }
  0x54   : > { %1426 = vmatpush3.bf16.msra.mxu0 %v1576_v11 }
  0x55   : > { %1487 = vmatprep.subr.bf16.mxu0 %v1583_v31 }
  0x57   : > { %1428 = vmatmul.mubr.bf16.vlgmr.msra.gmra.mxu0 %v388_v16 }
  0x58   : > { %1431 = vmatprep.mubr.bf16.mxu0 %v389_v17  ;;  %1488 = vmatpush3.bf16.msra.mxu0 %v1583_v31 }
  0x5f   : > { %1432 = vmatmul.mubr.bf16.gmra.mxu0 %v390_v22 }
  0x60   : > { %1435 = vmatprep.mubr.bf16.mxu0 %v391_v23 }
  0x67   : > { %1436 = vmatmul.mubr.bf16.gmra.mxu0 %v392_v28 }
  0x68   : > { %1439 = vmatprep.mubr.bf16.mxu0 %v393_v29 }
  0x6f   : > { %1440 = vmatmul.mubr.bf16.gmra.mxu0 %v394_v32  ;;  %v1584_v32 = vld [vmem:[%s2111_s7 + $0x10] sm:$0xff]  }
  0x70   : > { %1489 = vmatprep.subr.bf16.mxu0 %v1584_v32 }
  0x71   : > { %1490 = vmatpush3.bf16.msra.mxu0 %v1584_v32 }
 0x117   : > { %v1429_v37 = vpop.f32.mrf.mxu0 }
 0x118   : > { %v492_v43 = vadd.f32 %v1429_v37, %v1292_v39 }
 0x119   : > { %v483_v38 = vpop.f32.mrf.mxu0 }
 0x11a   : > { %v484_v41 = vadd.f32 %v1292_v39, %v483_v38  ;;  %v548_v50 = vmax.f32 %v492_v43, 0.0 }
 0x11b   : > { %v1430_v40 = vpop.f32.mrf.mxu0 }
 0x11c   : > { %v495_v42 = vadd.f32 %v1430_v40, %v1292_v39  ;;  %v546_v48 = vmax.f32 %v484_v41, 0.0 }
 0x11d   : > { %v486_v44 = vpop.f32.mrf.mxu0 }
 0x11e   : > { %v487_v45 = vadd.f32 %v1292_v39, %v486_v44  ;;  %v549_v46 = vmax.f32 %v495_v42, 0.0 }
 0x11f   : > { %v1433_v47 = vpop.f32.mrf.mxu0 }
 0x120   : > { %v547_v49 = vmax.f32 %v487_v45, 0.0  ;;  %v572_v53 = vpack.c.bf16 %v549_v46, %v548_v50  ;;  %v508_v58 = vadd.f32 %v1433_v47, %v1292_v39 }
 0x121   : > { %v499_v51 = vpop.f32.mrf.mxu0 }
 0x122   : > { %v571_v52 = vpack.c.bf16 %v547_v49, %v546_v48  ;;  %v500_v56 = vadd.f32 %v1292_v39, %v499_v51  ;;  %v552_v1 = vmax.f32 %v508_v58, 0.0 }
 0x123   : > { %v1434_v54 = vpop.f32.mrf.mxu0 }
 0x124   : > { %v511_v57 = vadd.f32 %v1434_v54, %v1292_v39  ;;  %1451 = vmatprep.mubr.msk.bf16.mxu1 %vm609_vm0, %v571_v52  ;;  %v550_v63 = vmax.f32 %v500_v56, 0.0 }
 0x125   : > { %v502_v59 = vpop.f32.mrf.mxu0  ;;  %1452 = vmatmul.mubr.msk.bf16.vlgmr.msra.gmra.mxu1 %vm609_vm0, %v572_v53 }
 0x126   : > { %v503_v60 = vadd.f32 %v1292_v39, %v502_v59  ;;  %1468 = vmatpush3.bf16.msra.mxu1 %v1581_v36  ;;  %v553_v61 = vmax.f32 %v511_v57, 0.0 }
 0x127   : > { %v1437_v62 = vpop.f32.mrf.mxu0  ;;  %1469 = vmatprep.subr.bf16.mxu1 %v1582_v55 }
 0x128   : > { %v551_v0 = vmax.f32 %v503_v60, 0.0  ;;  %v574_v4 = vpack.c.bf16 %v553_v61, %v552_v1  ;;  %v524_v8 = vadd.f32 %v1437_v62, %v1292_v39 }
 0x129   : > { %v515_v2 = vpop.f32.mrf.mxu0 }
 0x12a   : > { %v573_v3 = vpack.c.bf16 %v551_v0, %v550_v63  ;;  %1470 = vmatpush3.bf16.msra.mxu1 %v1582_v55  ;;  %v516_v6 = vadd.f32 %v1292_v39, %v515_v2  ;;  %v556_v15 = vmax.f32 %v524_v8, 0.0 }
 0x12b   : > { %v1438_v5 = vpop.f32.mrf.mxu0  ;;  %1511 = vmatprep.subr.bf16.mxu1 %v1583_v31 }
 0x12c   : > { %v527_v7 = vadd.f32 %v1438_v5, %v1292_v39  ;;  %1455 = vmatprep.mubr.msk.bf16.mxu1 %vm609_vm0, %v573_v3  ;;  %v554_v13 = vmax.f32 %v516_v6, 0.0 }
 0x12d   : > { %v518_v9 = vpop.f32.mrf.mxu0  ;;  %1456 = vmatmul.mubr.msk.bf16.gmra.mxu1 %vm609_vm0, %v574_v4 }
 0x12e   : > { %v519_v10 = vadd.f32 %v1292_v39, %v518_v9  ;;  %v557_v11 = vmax.f32 %v527_v7, 0.0 }
 0x12f   : > { %v1441_v12 = vpop.f32.mrf.mxu0 }
 0x130   : > { %v555_v14 = vmax.f32 %v519_v10, 0.0  ;;  %v576_v18 = vpack.c.bf16 %v557_v11, %v556_v15  ;;  %v540_v22 = vadd.f32 %v1441_v12, %v1292_v39 }
 0x131   : > { %v531_v16 = vpop.f32.mrf.mxu0 }
 0x132   : > { %v575_v17 = vpack.c.bf16 %v555_v14, %v554_v13  ;;  %v532_v20 = vadd.f32 %v1292_v39, %v531_v16  ;;  %v560_v28 = vmax.f32 %v540_v22, 0.0 }
 0x133   : > { %v1442_v19 = vpop.f32.mrf.mxu0 }
 0x134   : > { %v543_v21 = vadd.f32 %v1442_v19, %v1292_v39  ;;  %1459 = vmatprep.mubr.msk.bf16.mxu1 %vm609_vm0, %v575_v17  ;;  %v558_v26 = vmax.f32 %v532_v20, 0.0 }
 0x135   : > { %v534_v23 = vpop.f32.mrf.mxu0  ;;  %1460 = vmatmul.mubr.msk.bf16.gmra.mxu1 %vm609_vm0, %v576_v18 }
 0x136   : > { %v535_v24 = vadd.f32 %v1292_v39, %v534_v23  ;;  %v561_v25 = vmax.f32 %v543_v21, 0.0 }
 0x138   : > { %v559_v27 = vmax.f32 %v535_v24, 0.0  ;;  %v578_v30 = vpack.c.bf16 %v561_v25, %v560_v28 }
 0x13a   : > { %v577_v29 = vpack.c.bf16 %v559_v27, %v558_v26  ;;  %v1585_v26 = vld [vmem:[%s2111_s7 + $0x8] sm:$0xff]   ;;  %v1586_v27 = vld [vmem:[%s2111_s7] sm:$0xff]  }
 0x13b   : > { %1491 = vmatprep.subr.bf16.mxu0 %v1585_v26 }
 0x13c   : > { %1463 = vmatprep.mubr.msk.bf16.mxu1 %vm609_vm0, %v577_v29  ;;  %1492 = vmatpush3.bf16.msra.mxu0 %v1585_v26 }
 0x13d   : > { %1464 = vmatmul.mubr.msk.bf16.gmra.mxu1 %vm609_vm0, %v578_v30  ;;  %1493 = vmatprep.subr.bf16.mxu0 %v1586_v27  ;;  %v1314_v30 = vld [vmem:[%s2110_s6] ss:$0 sm:$0xff] }
 0x140   : > { %1494 = vmatpush3.bf16.msra.mxu0 %v1586_v27 }
 0x1e5   : > { %v1453_v33 = vpop.f32.mrf.mxu1 }
 0x1e6   : > { %v677_v39 = vadd.f32 %v1453_v33, %v1301_v35 }
 0x1e7   : > { %v668_v34 = vpop.f32.mrf.mxu1 }
 0x1e8   : > { %v669_v37 = vadd.f32 %v1301_v35, %v668_v34  ;;  %v733_v46 = vmax.f32 %v677_v39, 0.0 }
 0x1e9   : > { %v1454_v36 = vpop.f32.mrf.mxu1 }
 0x1ea   : > { %v680_v38 = vadd.f32 %v1454_v36, %v1301_v35  ;;  %v731_v44 = vmax.f32 %v669_v37, 0.0 }
 0x1eb   : > { %v671_v40 = vpop.f32.mrf.mxu1 }
 0x1ec   : > { %v672_v41 = vadd.f32 %v1301_v35, %v671_v40  ;;  %v734_v42 = vmax.f32 %v680_v38, 0.0 }
 0x1ed   : > { %v1457_v43 = vpop.f32.mrf.mxu1 }
 0x1ee   : > { %v732_v45 = vmax.f32 %v672_v41, 0.0  ;;  %v753_v49 = vpack.c.bf16 %v734_v42, %v733_v46  ;;  %v693_v53 = vadd.f32 %v1457_v43, %v1301_v35 }
 0x1ef   : > { %v684_v47 = vpop.f32.mrf.mxu1 }
 0x1f0   : > { %v752_v48 = vpack.c.bf16 %v732_v45, %v731_v44  ;;  %v685_v51 = vadd.f32 %v1301_v35, %v684_v47  ;;  %v737_v60 = vmax.f32 %v693_v53, 0.0 }
 0x1f1   : > { %v1458_v50 = vpop.f32.mrf.mxu1 }
 0x1f2   : > { %v696_v52 = vadd.f32 %v1458_v50, %v1301_v35  ;;  %1471 = vmatprep.mubr.msk.bf16.mxu1 %vm778_vm1, %v752_v48  ;;  %v735_v58 = vmax.f32 %v685_v51, 0.0 }
 0x1f3   : > { %v687_v54 = vpop.f32.mrf.mxu1  ;;  %1472 = vmatmul.mubr.msk.bf16.vlgmr.msra.gmra.mxu1 %vm778_vm1, %v753_v49 }
 0x1f4   : > { %v688_v55 = vadd.f32 %v1301_v35, %v687_v54  ;;  %1515 = vmatpush3.bf16.msra.mxu1 %v1583_v31  ;;  %v738_v56 = vmax.f32 %v696_v52, 0.0 }
 0x1f5   : > { %v1461_v57 = vpop.f32.mrf.mxu1  ;;  %1512 = vmatprep.subr.bf16.mxu1 %v1584_v32 }
 0x1f6   : > { %v736_v59 = vmax.f32 %v688_v55, 0.0  ;;  %v755_v63 = vpack.c.bf16 %v738_v56, %v737_v60  ;;  %v709_v3 = vadd.f32 %v1461_v57, %v1301_v35 }
 0x1f7   : > { %v700_v61 = vpop.f32.mrf.mxu1 }
 0x1f8   : > { %v754_v62 = vpack.c.bf16 %v736_v59, %v735_v58  ;;  %1516 = vmatpush3.bf16.msra.mxu1 %v1584_v32  ;;  %v701_v1 = vadd.f32 %v1301_v35, %v700_v61  ;;  %v741_v10 = vmax.f32 %v709_v3, 0.0 }
 0x1f9   : > { %v1462_v0 = vpop.f32.mrf.mxu1  ;;  %1513 = vmatprep.subr.bf16.mxu1 %v1585_v26 }
 0x1fa   : > { %v712_v2 = vadd.f32 %v1462_v0, %v1301_v35  ;;  %1475 = vmatprep.mubr.msk.bf16.mxu1 %vm778_vm1, %v754_v62  ;;  %v739_v8 = vmax.f32 %v701_v1, 0.0 }
 0x1fb   : > { %v703_v4 = vpop.f32.mrf.mxu1  ;;  %1476 = vmatmul.mubr.msk.bf16.gmra.mxu1 %vm778_vm1, %v755_v63 }
 0x1fc   : > { %v704_v5 = vadd.f32 %v1301_v35, %v703_v4  ;;  %v742_v6 = vmax.f32 %v712_v2, 0.0  ;;  %1517 = vmatpush3.bf16.msra.mxu1 %v1585_v26 }
 0x1fd   : > { %v1465_v7 = vpop.f32.mrf.mxu1  ;;  %1514 = vmatprep.subr.bf16.mxu1 %v1586_v27 }
 0x1fe   : > { %v740_v9 = vmax.f32 %v704_v5, 0.0  ;;  %v757_v13 = vpack.c.bf16 %v742_v6, %v741_v10  ;;  %v725_v17 = vadd.f32 %v1465_v7, %v1301_v35 }
 0x1ff   : > { %v716_v11 = vpop.f32.mrf.mxu1 }
 0x200   : > { %v756_v12 = vpack.c.bf16 %v740_v9, %v739_v8  ;;  %v717_v15 = vadd.f32 %v1301_v35, %v716_v11  ;;  %v745_v23 = vmax.f32 %v725_v17, 0.0  ;;  %1518 = vmatpush3.bf16.msra.mxu1 %v1586_v27 }
 0x201   : > { %v1466_v14 = vpop.f32.mrf.mxu1 }
 0x202   : > { %v728_v16 = vadd.f32 %v1466_v14, %v1301_v35  ;;  %1479 = vmatprep.mubr.msk.bf16.mxu1 %vm778_vm1, %v756_v12  ;;  %v743_v21 = vmax.f32 %v717_v15, 0.0 }
 0x203   : > { %v719_v18 = vpop.f32.mrf.mxu1  ;;  %1480 = vmatmul.mubr.msk.bf16.gmra.mxu1 %vm778_vm1, %v757_v13 }
 0x204   : > { %v720_v19 = vadd.f32 %v1301_v35, %v719_v18  ;;  %v746_v20 = vmax.f32 %v728_v16, 0.0 }
 0x206   : > { %v744_v22 = vmax.f32 %v720_v19, 0.0  ;;  %v759_v25 = vpack.c.bf16 %v746_v20, %v745_v23 }
 0x208   : > { %v758_v24 = vpack.c.bf16 %v744_v22, %v743_v21  ;;  %v2016_v21 = vld [vmem:[%s2112_s8] ss:$0 sm:$0xff] }
 0x20a   : > { %1483 = vmatprep.mubr.msk.bf16.mxu1 %vm778_vm1, %v758_v24 }
 0x20b   : > { %1484 = vmatmul.mubr.msk.bf16.gmra.mxu1 %vm778_vm1, %v759_v25 }
 0x2b3   : > { %v1473_v28 = vpop.f32.mrf.mxu1 }
 0x2b4   : > { %v846_v34 = vadd.f32 %v1473_v28, %v1314_v30 }
 0x2b5   : > { %v837_v29 = vpop.f32.mrf.mxu1 }
 0x2b6   : > { %v838_v32 = vadd.f32 %v1314_v30, %v837_v29  ;;  %v902_v41 = vmax.f32 %v846_v34, 0.0 }
 0x2b7   : > { %v1474_v31 = vpop.f32.mrf.mxu1 }
 0x2b8   : > { %v849_v33 = vadd.f32 %v1474_v31, %v1314_v30  ;;  %v900_v39 = vmax.f32 %v838_v32, 0.0 }
 0x2b9   : > { %v840_v35 = vpop.f32.mrf.mxu1 }
 0x2ba   : > { %v841_v36 = vadd.f32 %v1314_v30, %v840_v35  ;;  %v903_v37 = vmax.f32 %v849_v33, 0.0 }
 0x2bb   : > { %v1477_v38 = vpop.f32.mrf.mxu1 }
 0x2bc   : > { %v901_v40 = vmax.f32 %v841_v36, 0.0  ;;  %v926_v44 = vpack.c.bf16 %v903_v37, %v902_v41  ;;  %v862_v48 = vadd.f32 %v1477_v38, %v1314_v30 }
 0x2bd   : > { %v853_v42 = vpop.f32.mrf.mxu1 }
 0x2be   : > { %v925_v43 = vpack.c.bf16 %v901_v40, %v900_v39  ;;  %v854_v46 = vadd.f32 %v1314_v30, %v853_v42  ;;  %v906_v55 = vmax.f32 %v862_v48, 0.0 }
 0x2bf   : > { %v1478_v45 = vpop.f32.mrf.mxu1 }
 0x2c0   : > { %v865_v47 = vadd.f32 %v1478_v45, %v1314_v30  ;;  %1495 = vmatprep.mubr.msk.bf16.mxu0 %vm609_vm0, %v925_v43  ;;  %v904_v53 = vmax.f32 %v854_v46, 0.0 }
 0x2c1   : > { %v856_v49 = vpop.f32.mrf.mxu1  ;;  %1496 = vmatmul.mubr.msk.bf16.vlgmr.msra.gmra.mxu0 %vm609_vm0, %v926_v44 }
 0x2c2   : > { %v857_v50 = vadd.f32 %v1314_v30, %v856_v49  ;;  %v907_v51 = vmax.f32 %v865_v47, 0.0 }
 0x2c3   : > { %v1481_v52 = vpop.f32.mrf.mxu1 }
 0x2c4   : > { %v905_v54 = vmax.f32 %v857_v50, 0.0  ;;  %v928_v58 = vpack.c.bf16 %v907_v51, %v906_v55  ;;  %v878_v62 = vadd.f32 %v1481_v52, %v1314_v30 }
 0x2c5   : > { %v869_v56 = vpop.f32.mrf.mxu1 }
 0x2c6   : > { %v927_v57 = vpack.c.bf16 %v905_v54, %v904_v53  ;;  %v870_v60 = vadd.f32 %v1314_v30, %v869_v56  ;;  %v910_v5 = vmax.f32 %v878_v62, 0.0 }
 0x2c7   : > { %v1482_v59 = vpop.f32.mrf.mxu1 }
 0x2c8   : > { %v881_v61 = vadd.f32 %v1482_v59, %v1314_v30  ;;  %1499 = vmatprep.mubr.msk.bf16.mxu0 %vm609_vm0, %v927_v57  ;;  %v908_v3 = vmax.f32 %v870_v60, 0.0 }
 0x2c9   : > { %v872_v63 = vpop.f32.mrf.mxu1  ;;  %1500 = vmatmul.mubr.msk.bf16.gmra.mxu0 %vm609_vm0, %v928_v58 }
 0x2ca   : > { %v873_v0 = vadd.f32 %v1314_v30, %v872_v63  ;;  %v911_v1 = vmax.f32 %v881_v61, 0.0 }
 0x2cb   : > { %v1485_v2 = vpop.f32.mrf.mxu1 }
 0x2cc   : > { %v909_v4 = vmax.f32 %v873_v0, 0.0  ;;  %v930_v8 = vpack.c.bf16 %v911_v1, %v910_v5  ;;  %v894_v12 = vadd.f32 %v1485_v2, %v1314_v30 }
 0x2cd   : > { %v885_v6 = vpop.f32.mrf.mxu1 }
 0x2ce   : > { %v929_v7 = vpack.c.bf16 %v909_v4, %v908_v3  ;;  %v886_v10 = vadd.f32 %v1314_v30, %v885_v6  ;;  %v914_v18 = vmax.f32 %v894_v12, 0.0 }
 0x2cf   : > { %v1486_v9 = vpop.f32.mrf.mxu1 }
 0x2d0   : > { %v897_v11 = vadd.f32 %v1486_v9, %v1314_v30  ;;  %1503 = vmatprep.mubr.msk.bf16.mxu0 %vm609_vm0, %v929_v7  ;;  %v912_v16 = vmax.f32 %v886_v10, 0.0 }
 0x2d1   : > { %v888_v13 = vpop.f32.mrf.mxu1  ;;  %1504 = vmatmul.mubr.msk.bf16.gmra.mxu0 %vm609_vm0, %v930_v8 }
 0x2d2   : > { %v889_v14 = vadd.f32 %v1314_v30, %v888_v13  ;;  %v915_v15 = vmax.f32 %v897_v11, 0.0 }
 0x2d4   : > { %v913_v17 = vmax.f32 %v889_v14, 0.0  ;;  %v932_v20 = vpack.c.bf16 %v915_v15, %v914_v18 }
 0x2d6   : > { %v931_v19 = vpack.c.bf16 %v913_v17, %v912_v16 }
 0x2d8   : > { %1507 = vmatprep.mubr.msk.bf16.mxu1 %vm609_vm0, %v931_v19 }
 0x2d9   : > { %1508 = vmatmul.mubr.msk.bf16.vlgmr.msra.gmra.mxu1 %vm609_vm0, %v932_v20 }
 0x381   : > { %v1497_v22 = vpop.f32.mrf.mxu0 }
 0x382   : > { %v1030_v23 = vadd.f32 %v1497_v22, %v2016_v21 }
 0x383   : > { %v1021_v24 = vpop.f32.mrf.mxu0 }
 0x384   : > { %v1340_v25 = vmul.f32 -1.442695, %v1030_v23  ;;  %v1022_v26 = vadd.f32 %v2016_v21, %v1021_v24 }
 0x385   : > { %v1498_v27 = vpop.f32.mrf.mxu0 }
 0x386   : > { %1587 = vpow2.f32 %v1340_v25  ;;  %v1338_v28 = vmul.f32 -1.442695, %v1022_v26  ;;  %v1033_v29 = vadd.f32 %v1498_v27, %v2016_v21 }
 0x387   : > { %v1024_v30 = vpop.f32.mrf.mxu0 }
 0x388   : > { %1589 = vpow2.f32 %v1338_v28  ;;  %v1341_v31 = vmul.f32 -1.442695, %v1033_v29  ;;  %v1025_v32 = vadd.f32 %v2016_v21, %v1024_v30 }
 0x389   : > { %v1501_v33 = vpop.f32.mrf.mxu0 }
 0x38a   : > { %1591 = vpow2.f32 %v1341_v31  ;;  %v1339_v34 = vmul.f32 -1.442695, %v1025_v32  ;;  %v1046_v35 = vadd.f32 %v1501_v33, %v2016_v21 }
 0x38b   : > { %v1037_v36 = vpop.f32.mrf.mxu0 }
 0x38c   : > { %1593 = vpow2.f32 %v1339_v34  ;;  %v1344_v37 = vmul.f32 -1.442695, %v1046_v35  ;;  %v1038_v38 = vadd.f32 %v2016_v21, %v1037_v36 }
 0x38d   : > { %v1502_v39 = vpop.f32.mrf.mxu0 }
 0x38e   : > { %1595 = vpow2.f32 %v1344_v37  ;;  %v1342_v40 = vmul.f32 -1.442695, %v1038_v38  ;;  %v1049_v41 = vadd.f32 %v1502_v39, %v2016_v21 }
 0x38f   : > { %v1040_v42 = vpop.f32.mrf.mxu0 }
 0x390   : > { %1597 = vpow2.f32 %v1342_v40  ;;  %v1345_v43 = vmul.f32 -1.442695, %v1049_v41  ;;  %v1041_v44 = vadd.f32 %v2016_v21, %v1040_v42 }
 0x391   : > { %v1505_v45 = vpop.f32.mrf.mxu0 }
 0x392   : > { %1599 = vpow2.f32 %v1345_v43  ;;  %v1343_v46 = vmul.f32 -1.442695, %v1041_v44  ;;  %v1062_v47 = vadd.f32 %v1505_v45, %v2016_v21 }
 0x393   : > { %v1588_v48 = vpop.eup %1587  ;;  %v1053_v49 = vpop.f32.mrf.mxu0 }
 0x394   : > { %v1134_v50 = vadd.f32 1.0, %v1588_v48  ;;  %1601 = vpow2.f32 %v1343_v46  ;;  %v1348_v51 = vmul.f32 -1.442695, %v1062_v47  ;;  %v1054_v52 = vadd.f32 %v2016_v21, %v1053_v49 }
 0x395   : > { %v1590_v53 = vpop.eup %1589  ;;  %v1506_v54 = vpop.f32.mrf.mxu0 }
 0x396   : > { %1603 = vrcp.f32 %v1134_v50  ;;  %v1132_v55 = vadd.f32 1.0, %v1590_v53  ;;  %v1346_v56 = vmul.f32 -1.442695, %v1054_v52  ;;  %v1065_v57 = vadd.f32 %v1506_v54, %v2016_v21 }
 0x397   : > { %v1592_v58 = vpop.eup %1591  ;;  %1605 = vpow2.f32 %v1348_v51  ;;  %v1056_v59 = vpop.f32.mrf.mxu0 }
 0x398   : > { %1607 = vrcp.f32 %v1132_v55  ;;  %v1135_v60 = vadd.f32 1.0, %v1592_v58  ;;  %v1349_v61 = vmul.f32 -1.442695, %v1065_v57  ;;  %v1057_v62 = vadd.f32 %v2016_v21, %v1056_v59 }
 0x399   : > { %v1594_v63 = vpop.eup %1593  ;;  %1609 = vpow2.f32 %v1346_v56  ;;  %v1509_v0 = vpop.f32.mrf.mxu1 }
 0x39a   : > { %1611 = vrcp.f32 %v1135_v60  ;;  %v1133_v1 = vadd.f32 1.0, %v1594_v63  ;;  %v1347_v2 = vmul.f32 -1.442695, %v1057_v62  ;;  %v1078_v3 = vadd.f32 %v1509_v0, %v2016_v21 }
 0x39b   : > { %v1596_v4 = vpop.eup %1595  ;;  %1613 = vpow2.f32 %v1349_v61  ;;  %v1069_v5 = vpop.f32.mrf.mxu1 }
 0x39c   : > { %1615 = vrcp.f32 %v1133_v1  ;;  %v1138_v6 = vadd.f32 1.0, %v1596_v4  ;;  %v1352_v7 = vmul.f32 -1.442695, %v1078_v3  ;;  %v1070_v8 = vadd.f32 %v2016_v21, %v1069_v5 }
 0x39d   : > { %v1598_v9 = vpop.eup %1597  ;;  %1617 = vpow2.f32 %v1347_v2  ;;  %v1510_v10 = vpop.f32.mrf.mxu1 }
 0x39e   : > { %1619 = vrcp.f32 %v1138_v6  ;;  %v1136_v11 = vadd.f32 1.0, %v1598_v9  ;;  %v1350_v12 = vmul.f32 -1.442695, %v1070_v8  ;;  %v1081_v13 = vadd.f32 %v1510_v10, %v2016_v21 }
 0x39f   : > { %v1600_v14 = vpop.eup %1599  ;;  %1621 = vpow2.f32 %v1352_v7  ;;  %v1072_v15 = vpop.f32.mrf.mxu1 }
 0x3a0   : > { %1623 = vrcp.f32 %v1136_v11  ;;  %v1139_v16 = vadd.f32 1.0, %v1600_v14  ;;  %v1353_v17 = vmul.f32 -1.442695, %v1081_v13  ;;  %v1073_v18 = vadd.f32 %v2016_v21, %v1072_v15 }
 0x3a1   : > { %v1602_v19 = vpop.eup %1601  ;;  %1625 = vpow2.f32 %v1350_v12 }
 0x3a2   : > { %1627 = vrcp.f32 %v1139_v16  ;;  %v1137_v20 = vadd.f32 1.0, %v1602_v19  ;;  %v1351_v22 = vmul.f32 -1.442695, %v1073_v18 }
 0x3a3   : > { %v1604_v23 = vpop.eup %1603  ;;  %1629 = vpow2.f32 %v1353_v17 }
 0x3a4   : > { %v1606_v24 = vpop.eup %1605  ;;  %1182 = vst [vmem:[%s2036_s26 + $0x10] sm:$0xff] %v1604_v23  ;;  %1631 = vrcp.f32 %v1137_v20 }
 0x3a5   : > { %v1608_v25 = vpop.eup %1607  ;;  %v1142_v26 = vadd.f32 1.0, %v1606_v24  ;;  %1633 = vpow2.f32 %v1351_v22 }
 0x3a6   : > { %v1610_v21 = vpop.eup %1609  ;;  %1180 = vst [vmem:[%s2036_s26] sm:$0xff] %v1608_v25 }
 0x3a7   : > { %v1612_v27 = vpop.eup %1611  ;;  %1635 = vrcp.f32 %v1142_v26  ;;  %v1140_v28 = vadd.f32 1.0, %v1610_v21 }
 0x3a8   : > { %v1614_v29 = vpop.eup %1613  ;;  %1183 = vst [vmem:[%s2036_s26 + $0x18] sm:$0xff] %v1612_v27 }
 0x3a9   : > { %v1616_v30 = vpop.eup %1615  ;;  %1637 = vrcp.f32 %v1140_v28  ;;  %v1143_v31 = vadd.f32 1.0, %v1614_v29 }
 0x3aa   : > { %v1618_v32 = vpop.eup %1617  ;;  %1181 = vst [vmem:[%s2036_s26 + $0x8] sm:$0xff] %v1616_v30 }
 0x3ab   : > { %v1620_v33 = vpop.eup %1619  ;;  %1639 = vrcp.f32 %v1143_v31  ;;  %v1141_v34 = vadd.f32 1.0, %v1618_v32 }
 0x3ac   : > { %v1622_v35 = vpop.eup %1621  ;;  %1186 = vst [vmem:[%s2036_s26 + $0x30] sm:$0xff] %v1620_v33 }
 0x3ad   : > { %v1624_v36 = vpop.eup %1623  ;;  %1641 = vrcp.f32 %v1141_v34  ;;  %v1146_v37 = vadd.f32 1.0, %v1622_v35 }
 0x3ae   : > { %v1626_v38 = vpop.eup %1625  ;;  %1184 = vst [vmem:[%s2036_s26 + $0x20] sm:$0xff] %v1624_v36 }
 0x3af   : > { %v1628_v39 = vpop.eup %1627  ;;  %1643 = vrcp.f32 %v1146_v37  ;;  %v1144_v40 = vadd.f32 1.0, %v1626_v38 }
 0x3b0   : > { %v1630_v41 = vpop.eup %1629  ;;  %1187 = vst [vmem:[%s2036_s26 + $0x38] sm:$0xff] %v1628_v39 }
 0x3b1   : > { %v1632_v42 = vpop.eup %1631  ;;  %1645 = vrcp.f32 %v1144_v40  ;;  %v1147_v43 = vadd.f32 1.0, %v1630_v41 }
 0x3b2   : > { %v1634_v44 = vpop.eup %1633  ;;  %1185 = vst [vmem:[%s2036_s26 + $0x28] sm:$0xff] %v1632_v42 }
 0x3b3   : > { %1647 = vrcp.f32 %v1147_v43  ;;  %v1145_v45 = vadd.f32 1.0, %v1634_v44 }
 0x3b4   : > { %v1636_v46 = vpop.eup %1635 }
 0x3b5   : > { %1190 = vst [vmem:[%s2036_s26 + $0x50] sm:$0xff] %v1636_v46  ;;  %1649 = vrcp.f32 %v1145_v45 }
 0x3b6   : > { %v1638_v47 = vpop.eup %1637 }
 0x3b7   : > { %1188 = vst [vmem:[%s2036_s26 + $0x40] sm:$0xff] %v1638_v47 }
 0x3b8   : > { %v1640_v48 = vpop.eup %1639 }
 0x3b9   : > { %1191 = vst [vmem:[%s2036_s26 + $0x58] sm:$0xff] %v1640_v48 }
 0x3ba   : > { %v1642_v49 = vpop.eup %1641 }
 0x3bb   : > { %1189 = vst [vmem:[%s2036_s26 + $0x48] sm:$0xff] %v1642_v49 }
 0x3bc   : > { %v1644_v50 = vpop.eup %1643 }
 0x3bd   : > { %1194 = vst [vmem:[%s2036_s26 + $0x70] sm:$0xff] %v1644_v50 }
 0x3be   : > { %v1646_v51 = vpop.eup %1645 }
 0x3bf   : > { %1192 = vst [vmem:[%s2036_s26 + $0x60] sm:$0xff] %v1646_v51 }
 0x3c0   : > { %v1648_v52 = vpop.eup %1647 }
 0x3c1   : > { %1195 = vst [vmem:[%s2036_s26 + $0x78] sm:$0xff] %v1648_v52 }
 0x3c2   : > { %v1650_v53 = vpop.eup %1649 }
 0x3c3   : > { %1193 = vst [vmem:[%s2036_s26 + $0x68] sm:$0xff] %v1650_v53 }
 0x3c4   : > { %1692 = shalt.err (!%p1689_p10)
}
 0x3c5   : > { %s1693_s20 = scalar_lea.hbm %s2057_s27, 2048  ;;  %s1697_s26 = scalar_lea.hbm %s2113_s9, 4096 }
 0x3c6   : > { %p1694_p0 = scmp.ne.s32.totalorder %s2057_s27, %s1693_s20  ;;  %p1698_p1 = scmp.lt.s32.totalorder %s2057_s27, %s2113_s9 }
 0x3c7   : > { %p1699_p3 = scmp.lt.s32.totalorder %s1697_s26, %s1693_s20 }
 0x3c8   : > { %p1695_p2 = pnand %p1694_p0, %p2125_p12 }
 0x3c9   : > { %p1700_p6 = por %p1699_p3, %p1698_p1 }
 0x3ca   : > { %p1696_p9 = pneg %p1695_p2 }
 0x3cc   : > { %p1701_p11 = pnand %p1700_p6, %p1696_p9 }
 0x3ce   : > { %1704 = shalt.err (!%p1701_p11)
}
 0x3cf   : > { %s1749_s14 = smov 128   ;;  %s1750_s17 = smov 8  }
 0x3d0   : > { %1521 = dma.vmem_to_hbm [thread:$0]  (%p2125_p12), %s2059_s19, 2048, %s2057_s27, %s1197_s16, %s1749_s14, %s1749_s14, %s1750_s17  }
 0x3d1 PF: > { %s1225_s13 = sand.u32 1, %s1731_s30   ;;  %p2126_p13 = scmp.ne.s32.totalorder %s2122_s22, 0 }
 0x3d2   : > { %p2127_p4 = scmp.ge.s32.totalorder %s1743_s12, 2  ;;  %s1226_s23 = scalar_lea.sflag [#allocation4], %s1225_s13 }
 0x3d4   : > { %p1528_p5 = pnand %p2127_p4, %p2126_p13 }
 0x3d6   : > { %p1529_p7 = pneg %p1528_p5 }
 0x3d8   : > { %1726 = dma.done.wait (%p1529_p7), %s1226_s23, 2048  }
 0x3d9   : > { %1728 = vsyncadd (%p1529_p7), %s1226_s23, 4294965248  ;;  %s2128_s29 = sld [smem:[#allocation8_spill]]  ;;  %p22_p8 = scmp.ge.s32.totalorder %s1826_s15, 4  }
 0x3da   : > { %s2129_s11 = sld [smem:[#allocation9_spill]]  ;;  %s2130_s30 = smov %s1735_s10 }
 0x3db   : > { %s2132_s12 = smov %s1826_s15  ;;  %24 = sbr.rel (!%p22_p8) target bundleno = 5 (0x5), region = 101 }
 0x3df   : > { %s2131_s10 = smov %s2128_s29 }
 0x3e0   :  { %1231 = vsyncpa [#allocation3], 1 }
 0x3e1   :  { %1233 = vsyncpa [#allocation3 + $0x1], 1 }
 0x3e2   :  { %1234 = vsyncpa [#allocation4], 1 }
 0x3e3   :  { %1236 = vsyncpa [#allocation4 + $0x1], 1 }

</bundles_post_ra>
